<compile_context>
chip_gen: v6e
topology: v6e:2x2x1
jax: 0.10.0
libtpu: 0.0.40
codegen_flags: <defaults>
</compile_context>

<pallas_src>
import functools

import jax
import jax.numpy as jnp
from jax.experimental import pallas as pl
from jax.experimental.pallas import tpu as pltpu

LANES = 128
K_IN = 784          # 28 * 28 (NOT padded — 784 = 98*8, block dim == full dim)
H1 = 64
H2 = 36
NUM_CLASSES = 10
H1_PAD = LANES
H2_PAD = LANES
OUT_PAD = LANES
NEG_BIG = -1e30     # baked into padded b3 lanes so they drop out of the softmax


def mlp_kernel(x_ref, w1_ref, b1_ref, w2_ref, b2_ref, w3_ref, b3_ref, o_ref):
    # x: (TB, 784) bf16, weights bf16, biases f32, output (TB, 128) f32.
    x = x_ref[...]

    # hidden_1: Linear(784, 64) + ReLU   (w1/b1 padded lanes are zero -> h1[:, 64:] == 0)
    h1 = jnp.dot(x, w1_ref[...], preferred_element_type=jnp.float32) + b1_ref[...]
    h1 = jnp.maximum(h1, 0.0)
    # dropout(p=0.2): identity in eval mode

    # hidden_2: Linear(64, 36) + ReLU
    h2 = jnp.dot(h1.astype(jnp.bfloat16), w2_ref[...],
                 preferred_element_type=jnp.float32) + b2_ref[...]
    h2 = jnp.maximum(h2, 0.0)

    # output: Linear(36, 10).  w3's padded columns are zero and b3's padded
    # lanes are NEG_BIG, so logits[:, 10:] == NEG_BIG automatically — no extra
    # iota/where masking needed before the softmax reductions.
    logits = jnp.dot(h2.astype(jnp.bfloat16), w3_ref[...],
                     preferred_element_type=jnp.float32) + b3_ref[...]

    # log_softmax along dim=1 (numerically stable, f32)
    m = jnp.max(logits, axis=1, keepdims=True)
    shifted = logits - m
    lse = jnp.log(jnp.sum(jnp.exp(shifted), axis=1, keepdims=True))
    o_ref[...] = (shifted - lse).astype(o_ref.dtype)


def _round_up(n, m):
    return ((n + m - 1) // m) * m


def _plan_batch(B, tb_max):
    """Pick a batch tile (multiple of 8, <= tb_max) with >= 2 grid steps."""
    Bp8 = _round_up(B, 8)
    tb = min(tb_max, max(8, _round_up((Bp8 + 1) // 2, 8)))
    Bp = _round_up(B, tb)
    if Bp // tb < 2:
        # Keep at least 2 grid steps so "parallel" shards across both TCs on v7x.
        Bp = 2 * tb
    return tb, Bp


def init_params(key):
    """Deterministic init mimicking nn.Linear defaults (uniform +/- 1/sqrt(fan_in)).
    Weights are stored transposed vs PyTorch: (in_features, out_features)."""
    k = jax.random.split(key, 6)

    def linear(kw, kb, fan_in, fan_out):
        bound = 1.0 / (fan_in ** 0.5)
        w = jax.random.uniform(kw, (fan_in, fan_out), jnp.float32, -bound, bound)
        b = jax.random.uniform(kb, (1, fan_out), jnp.float32, -bound, bound)
        return w, b

    w1, b1 = linear(k[0], k[1], K_IN, H1)
    w2, b2 = linear(k[2], k[3], H1, H2)
    w3, b3 = linear(k[4], k[5], H2, NUM_CLASSES)
    return {"w1": w1, "b1": b1, "w2": w2, "b2": b2, "w3": w3, "b3": b3}


def prepare_params(params):
    """Zero-pad hidden/output feature dims to 128 lanes; cast weights to bf16.
    b3's padded lanes are filled with NEG_BIG (bakes the softmax mask into the bias add)."""
    def pad2(a, rows, cols, fill=0.0):
        out = jnp.full((rows, cols), fill, jnp.float32)
        return out.at[: a.shape[0], : a.shape[1]].set(a)

    w1 = pad2(params["w1"], K_IN, H1_PAD).astype(jnp.bfloat16)     # (784, 128)
    w2 = pad2(params["w2"], H1_PAD, H2_PAD).astype(jnp.bfloat16)   # (128, 128)
    w3 = pad2(params["w3"], H2_PAD, OUT_PAD).astype(jnp.bfloat16)  # (128, 128)
    b1 = pad2(params["b1"], 1, H1_PAD)
    b2 = pad2(params["b2"], 1, H2_PAD)
    b3 = pad2(params["b3"], 1, OUT_PAD, fill=NEG_BIG)
    return (w1, b1, w2, b2, w3, b3)


@functools.partial(jax.jit, static_argnames=("tb_max",))
def network_forward(x, padded_params, *, tb_max=1024):
    """x: (B, ...) flattened to (B, 784). Returns (B, 10) float32 log-probs.
    Pass x as bf16 to avoid an extra cast pass inside the jit."""
    B = x.shape[0]
    x = x.reshape(B, -1)
    if x.dtype != jnp.bfloat16:
        x = x.astype(jnp.bfloat16)

    tb, Bp = _plan_batch(B, tb_max)
    if Bp != B:
        # Only the batch axis is explicitly padded (with zeros); K stays 784.
        x = jnp.zeros((Bp, K_IN), jnp.bfloat16).at[:B, :].set(x)

    w1, b1, w2, b2, w3, b3 = padded_params
    grid = (Bp // tb,)

    out = pl.pallas_call(
        mlp_kernel,
        out_shape=jax.ShapeDtypeStruct((Bp, OUT_PAD), jnp.float32),
        grid_spec=pltpu.PrefetchScalarGridSpec(
            num_scalar_prefetch=0,
            grid=grid,
            in_specs=[
                pl.BlockSpec((tb, K_IN), lambda i: (i, 0)),          # x tile
                pl.BlockSpec((K_IN, H1_PAD), lambda i: (0, 0)),      # w1 (VMEM-resident)
                pl.BlockSpec((1, H1_PAD), lambda i: (0, 0)),         # b1
                pl.BlockSpec((H1_PAD, H2_PAD), lambda i: (0, 0)),    # w2
                pl.BlockSpec((1, H2_PAD), lambda i: (0, 0)),         # b2
                pl.BlockSpec((H2_PAD, OUT_PAD), lambda i: (0, 0)),   # w3
                pl.BlockSpec((1, OUT_PAD), lambda i: (0, 0)),        # b3 (mask baked in)
            ],
            out_specs=pl.BlockSpec((tb, OUT_PAD), lambda i: (i, 0)),
        ),
        compiler_params=pltpu.CompilerParams(
            dimension_semantics=("parallel",),
        ),
    )(x, w1, b1, w2, b2, w3, b3)

    return out[:B, :NUM_CLASSES]


def network_ref(x, params):
    """Pure-JAX f32 reference of the PyTorch forward (eval mode)."""
    x = x.reshape(x.shape[0], -1).astype(jnp.float32)
    h1 = jnp.maximum(x @ params["w1"] + params["b1"], 0.0)
    h2 = jnp.maximum(h1 @ params["w2"] + params["b2"], 0.0)
    logits = h2 @ params["w3"] + params["b3"]
    return jax.nn.log_softmax(logits, axis=1)


if __name__ == "__main__":
    key = jax.random.PRNGKey(0)
    k_params, k_x = jax.random.split(key)

    params = init_params(k_params)
    padded_params = prepare_params(params)

    # Input: batch of 8 flattened 28x28 MNIST-like images (B, 1, 28, 28) -> view(B, -1)
    B = 8
    x_img = jax.random.uniform(k_x, (B, 1, 28, 28), jnp.float32)
    x_bf16 = x_img.astype(jnp.bfloat16)   # cast upstream of the jit (no extra in-jit pass)

    out = network_forward(x_bf16, padded_params)
    out = jax.block_until_ready(out)

    # sanity: shape, log-probs exp-sum to ~1 per row, matches f32 reference
    assert out.shape == (B, NUM_CLASSES)
    row_sums = jnp.exp(out).sum(axis=1)
    assert bool(jnp.all(jnp.abs(row_sums - 1.0) < 1e-4))

    ref = network_ref(x_img, params)
    max_err = float(jnp.max(jnp.abs(out - ref)))
    assert max_err < 1e-1, f"max abs diff vs f32 reference too large: {max_err}"

    print("KERNEL_OK")
</pallas_src>

<mosaic_0001>
module attributes {stable_mosaic.version = 11 : i64} {
  func.func @mlp_kernel(%arg0: i32, %arg1: memref<8x784xbf16, #tpu.memory_space<vmem>>, %arg2: memref<784x128xbf16, #tpu.memory_space<vmem>>, %arg3: memref<1x128xf32, #tpu.memory_space<vmem>>, %arg4: memref<128x128xbf16, #tpu.memory_space<vmem>>, %arg5: memref<1x128xf32, #tpu.memory_space<vmem>>, %arg6: memref<128x128xbf16, #tpu.memory_space<vmem>>, %arg7: memref<1x128xf32, #tpu.memory_space<vmem>>, %arg8: memref<8x128xf32, #tpu.memory_space<vmem>>) attributes {dimension_semantics = [#tpu.dimension_semantics<parallel>], iteration_bounds = array<i64: 2>, scalar_prefetch = 0 : i64, scratch_operands = 0 : i64, tpu.core_type = #tpu.core_type<tc>, window_params = [{transform_indices = @transform_0, window_bounds = array<i64: 8, 784>}, {pipeline_mode = #tpu.pipeline_mode<synchronous>, transform_indices = @transform_1, window_bounds = array<i64: 784, 128>}, {pipeline_mode = #tpu.pipeline_mode<synchronous>, transform_indices = @transform_2, window_bounds = array<i64: 1, 128>}, {pipeline_mode = #tpu.pipeline_mode<synchronous>, transform_indices = @transform_3, window_bounds = array<i64: 128, 128>}, {pipeline_mode = #tpu.pipeline_mode<synchronous>, transform_indices = @transform_4, window_bounds = array<i64: 1, 128>}, {pipeline_mode = #tpu.pipeline_mode<synchronous>, transform_indices = @transform_5, window_bounds = array<i64: 128, 128>}, {pipeline_mode = #tpu.pipeline_mode<synchronous>, transform_indices = @transform_6, window_bounds = array<i64: 1, 128>}, {transform_indices = @transform_7, window_bounds = array<i64: 8, 128>}]} {
    %c0 = arith.constant 0 : index
    %c0_0 = arith.constant 0 : index
    %0 = vector.load %arg1[%c0, %c0_0] : memref<8x784xbf16, #tpu.memory_space<vmem>>, vector<8x784xbf16>
    %c0_1 = arith.constant 0 : index
    %c0_2 = arith.constant 0 : index
    %1 = vector.load %arg2[%c0_1, %c0_2] : memref<784x128xbf16, #tpu.memory_space<vmem>>, vector<784x128xbf16>
    %cst = arith.constant dense<0.000000e+00> : vector<8x128xf32>
    %2 = tpu.matmul %0, %1, %cst {dimension_numbers = #tpu.dot_dimension_numbers<[1], [0], [0], [1], [0, 0, 1, 1], [], []>} : vector<8x784xbf16>, vector<784x128xbf16>, vector<8x128xf32> -> vector<8x128xf32>
    %c0_3 = arith.constant 0 : index
    %c0_4 = arith.constant 0 : index
    %3 = vector.load %arg3[%c0_3, %c0_4] : memref<1x128xf32, #tpu.memory_space<vmem>>, vector<1x128xf32>
    %4 = vector.broadcast %3 : vector<1x128xf32> to vector<8x128xf32>
    %5 = arith.addf %2, %4 : vector<8x128xf32>
    %cst_5 = arith.constant 0.000000e+00 : f32
    %6 = vector.broadcast %cst_5 : f32 to vector<8x128xf32>
    %7 = arith.maximumf %5, %6 : vector<8x128xf32>
    %8 = arith.truncf %7 : vector<8x128xf32> to vector<8x128xbf16>
    %c0_6 = arith.constant 0 : index
    %c0_7 = arith.constant 0 : index
    %9 = vector.load %arg4[%c0_6, %c0_7] : memref<128x128xbf16, #tpu.memory_space<vmem>>, vector<128x128xbf16>
    %cst_8 = arith.constant dense<0.000000e+00> : vector<8x128xf32>
    %10 = tpu.matmul %8, %9, %cst_8 {dimension_numbers = #tpu.dot_dimension_numbers<[1], [0], [0], [1], [0, 0, 1, 1], [], []>} : vector<8x128xbf16>, vector<128x128xbf16>, vector<8x128xf32> -> vector<8x128xf32>
    %c0_9 = arith.constant 0 : index
    %c0_10 = arith.constant 0 : index
    %11 = vector.load %arg5[%c0_9, %c0_10] : memref<1x128xf32, #tpu.memory_space<vmem>>, vector<1x128xf32>
    %12 = vector.broadcast %11 : vector<1x128xf32> to vector<8x128xf32>
    %13 = arith.addf %10, %12 : vector<8x128xf32>
    %cst_11 = arith.constant 0.000000e+00 : f32
    %14 = vector.broadcast %cst_11 : f32 to vector<8x128xf32>
    %15 = arith.maximumf %13, %14 : vector<8x128xf32>
    %16 = arith.truncf %15 : vector<8x128xf32> to vector<8x128xbf16>
    %c0_12 = arith.constant 0 : index
    %c0_13 = arith.constant 0 : index
    %17 = vector.load %arg6[%c0_12, %c0_13] : memref<128x128xbf16, #tpu.memory_space<vmem>>, vector<128x128xbf16>
    %cst_14 = arith.constant dense<0.000000e+00> : vector<8x128xf32>
    %18 = tpu.matmul %16, %17, %cst_14 {dimension_numbers = #tpu.dot_dimension_numbers<[1], [0], [0], [1], [0, 0, 1, 1], [], []>} : vector<8x128xbf16>, vector<128x128xbf16>, vector<8x128xf32> -> vector<8x128xf32>
    %c0_15 = arith.constant 0 : index
    %c0_16 = arith.constant 0 : index
    %19 = vector.load %arg7[%c0_15, %c0_16] : memref<1x128xf32, #tpu.memory_space<vmem>>, vector<1x128xf32>
    %20 = vector.broadcast %19 : vector<1x128xf32> to vector<8x128xf32>
    %21 = arith.addf %18, %20 : vector<8x128xf32>
    %cst_17 = arith.constant dense<0xFF800000> : vector<8xf32>
    %22 = vector.multi_reduction <maximumf>, %21, %cst_17 [1] : vector<8x128xf32> to vector<8xf32>
    %23 = vector.shape_cast %22 : vector<8xf32> to vector<8x1xf32>
    %24 = vector.broadcast %23 : vector<8x1xf32> to vector<8x128xf32>
    %25 = arith.subf %21, %24 : vector<8x128xf32>
    %26 = math.exp %25 : vector<8x128xf32>
    %cst_18 = arith.constant dense<0.000000e+00> : vector<8xf32>
    %27 = vector.multi_reduction <add>, %26, %cst_18 [1] : vector<8x128xf32> to vector<8xf32>
    %28 = vector.shape_cast %27 : vector<8xf32> to vector<8x1xf32>
    %29 = math.log %28 : vector<8x1xf32>
    %30 = vector.broadcast %29 : vector<8x1xf32> to vector<8x128xf32>
    %31 = arith.subf %25, %30 : vector<8x128xf32>
    %c0_19 = arith.constant 0 : index
    %c0_20 = arith.constant 0 : index
    %32 = vector.load %arg8[%c0_19, %c0_20] : memref<8x128xf32, #tpu.memory_space<vmem>>, vector<8x128xf32>
    tpu.vector_store %arg8[%c0_19, %c0_20], %31 {strides = array<i32>} : memref<8x128xf32, #tpu.memory_space<vmem>>, vector<8x128xf32>,
    return
  }
  func.func @transform_0(%arg0: i32) -> (i32, i32) {
    %c0_i32 = arith.constant 0 : i32
    %c0_i32_0 = arith.constant 0 : i32
    return %arg0, %c0_i32 : i32, i32
  }
  func.func @transform_1(%arg0: i32) -> (i32, i32) {
    %c0_i32 = arith.constant 0 : i32
    %c0_i32_0 = arith.constant 0 : i32
    %c0_i32_1 = arith.constant 0 : i32
    return %c0_i32, %c0_i32_0 : i32, i32
  }
  func.func @transform_2(%arg0: i32) -> (i32, i32) {
    %c0_i32 = arith.constant 0 : i32
    %c0_i32_0 = arith.constant 0 : i32
    %c0_i32_1 = arith.constant 0 : i32
    return %c0_i32, %c0_i32_0 : i32, i32
  }
  func.func @transform_3(%arg0: i32) -> (i32, i32) {
    %c0_i32 = arith.constant 0 : i32
    %c0_i32_0 = arith.constant 0 : i32
    %c0_i32_1 = arith.constant 0 : i32
    return %c0_i32, %c0_i32_0 : i32, i32
  }
  func.func @transform_4(%arg0: i32) -> (i32, i32) {
    %c0_i32 = arith.constant 0 : i32
    %c0_i32_0 = arith.constant 0 : i32
    %c0_i32_1 = arith.constant 0 : i32
    return %c0_i32, %c0_i32_0 : i32, i32
  }
  func.func @transform_5(%arg0: i32) -> (i32, i32) {
    %c0_i32 = arith.constant 0 : i32
    %c0_i32_0 = arith.constant 0 : i32
    %c0_i32_1 = arith.constant 0 : i32
    return %c0_i32, %c0_i32_0 : i32, i32
  }
  func.func @transform_6(%arg0: i32) -> (i32, i32) {
    %c0_i32 = arith.constant 0 : i32
    %c0_i32_0 = arith.constant 0 : i32
    %c0_i32_1 = arith.constant 0 : i32
    return %c0_i32, %c0_i32_0 : i32, i32
  }
  func.func @transform_7(%arg0: i32) -> (i32, i32) {
    %c0_i32 = arith.constant 0 : i32
    %c0_i32_0 = arith.constant 0 : i32
    return %arg0, %c0_i32 : i32, i32
  }
}

</mosaic_0001>

<bundles_post_ra>
// kernel: network_forward.1
= control target key start
LH: loop header
LB: loop body
LE: loop exit
PB: predicated region body
PF: predicated region fallthrough
CT: control target
= control target key end

     0   :  { %12 = vsyncpa [#allocation3], 0  ;;  %s1588_s24 = smov 0   ;;  %s1840_s0 = inlined_call_operand.vmem [shape: bf16[16,784], index: 0, kind: input, shape index: {}]   ;;  %s1841_s1 = inlined_call_operand.vmem [shape: bf16[784,128], index: 1, kind: input, shape index: {}]   ;;  %s1842_s2 = inlined_call_operand.vmem [shape: f32[1,128], index: 2, kind: input, shape index: {}]   ;;  %s1843_s3 = inlined_call_operand.vmem [shape: bf16[128,128], index: 3, kind: input, shape index: {}]   ;;  %s1844_s4 = inlined_call_operand.vmem [shape: f32[1,128], index: 4, kind: input, shape index: {}]   ;;  %s1845_s5 = inlined_call_operand.hbm [shape: bf16[128,128], index: 5, kind: input, shape index: {}]   ;;  %s1846_s6 = inlined_call_operand.vmem [shape: f32[1,128], index: 6, kind: input, shape index: {}]   ;;  %s1847_s7 = inlined_call_operand.vmem [shape: f32[16,128], index: 7, kind: output, shape index: {}]  }
   0x1 LB: > { %s1594_s25 = sadd.s32 4294967295, %s1541_s24   ;;  %p1188_p0 = scmp.ge.s32.totalorder %s1541_s24, 1  ;;  %s1541_s24 = sphi %s1588_s24, %s18_s24  }
   0x2   : > { %p201_p1 = scmp.lt.s32.totalorder %s1541_s24, 3  ;;  %s1543_s26 = smov [#allocation2]  }
   0x3   : > { %s225_s27 = sshll.u32 %s1543_s26, 4  ;;  %p1414_p3 = scmp.eq.s32.totalorder %s1594_s25, 0  ;;  %s226_s27 = int_to_ptr.vmem [resolvable:$true] %s225_s27 }
   0x4   : > { %p1598_p2 = pnand %p1188_p0, %p201_p1  ;;  %s1516_s29 = scalar_lea.vmem %s226_s27, 1024 }
   0x5   : > { %p1517_p7 = scmp.ne.s32.totalorder %s226_s27, %s1516_s29  ;;  %p1524_p10 = scmp.lt.s32.totalorder %s226_s27, %s226_s27 }
   0x6   : > { %p1410_p4 = pneg %p1598_p2  ;;  %p1525_p11 = scmp.lt.s32.totalorder %s1516_s29, %s1516_s29 }
   0x8   : > { %p1411_p5 = pnand %p1414_p3, %p1410_p4  ;;  %p1526_p12 = por %p1525_p11, %p1524_p10 }
   0xa   : > { %p1507_p6 = pneg %p1411_p5 }
   0xc   : > { %p1519_p8 = pnand %p1517_p7, %p1507_p6 }
   0xe   : > { %p1520_p9 = pneg %p1519_p8 }
  0x10   : > { %p1527_p13 = pnand %p1526_p12, %p1520_p9 }
  0x12   : > { %1530 = shalt.err (!%p1527_p13)
}
  0x13   : > { %s1544_s30 = smov 64   ;;  %s1545_s8 = smov 4  }
  0x14   : > { %1413 = dma.hbm_to_vmem [thread:$0]  (!%p1411_p5), %s1845_s5, 1024, %s226_s27, [#allocation3], %s1544_s30, %s1544_s30, %s1545_s8  }
  0x15   : > { %252 = sbr.rel (%p1598_p2) target bundleno = 1004 (0x3ec), region = 48 }
  0x1a   : > { %1536 = dma.done.wait (%p1414_p3), [#allocation3], 1024  }
  0x1b   : > { %1538 = vsyncadd (%p1414_p3), [#allocation3], 4294966272  ;;  %v1429_v0 = vld [vmem:[%s1841_s1 + $0x78] sm:$0xff]   ;;  %v1433_v4 = vld [vmem:[%s1841_s1 + $0x70] sm:$0xff]   ;;  %p283_p0 = scmp.lt.s32.totalorder %s1594_s25, 1  ;;  %v1546_v41 = vmov 0.0  }
  0x1c   : > { %v1430_v1 = vld [vmem:[%s1841_s1 + $0x38] sm:$0xff]   ;;  %1273 = vmatprep.subr.bf16.mxu0 %v1429_v0  ;;  %v1434_v5 = vld [vmem:[%s1841_s1 + $0x30] sm:$0xff]   ;;  %v1437_v8 = vld [vmem:[%s1841_s1 + $0x68] sm:$0xff]   ;;  %vm1547_vm0 = vmmov 0   ;;  %vm720_vm1 = vcmask 130048  }
  0x1d   : > { %v1431_v2 = vld [vmem:[%s1841_s1 + $0xf8] sm:$0xff]   ;;  %1274 = vmatpush3.bf16.msra.mxu0 %v1430_v1  ;;  %v1435_v6 = vld [vmem:[%s1841_s1 + $0xf0] sm:$0xff]   ;;  %v1438_v9 = vld [vmem:[%s1841_s1 + $0x28] sm:$0xff]   ;;  %s1850_s25 = smov (!%p283_p0, %s1594_s25), 1 }
  0x1e   : > { %v1432_v3 = vld [vmem:[%s1841_s1 + $0xb8] sm:$0xff]   ;;  %1295 = vmatprep.subr.bf16.mxu1 %v1431_v2  ;;  %1275 = vmatprep.subr.bf16.mxu0 %v1433_v4  ;;  %v1436_v7 = vld [vmem:[%s1841_s1 + $0xb0] sm:$0xff]   ;;  %v1439_v10 = vld [vmem:[%s1841_s1 + $0xe8] sm:$0xff]   ;;  %s1405_s19 = smul.u32 28, %s1850_s25  ;;  %s1194_s10 = sshll.u32 %s1850_s25, 3 }
  0x1f   : > { %1296 = vmatpush3.bf16.msra.mxu1 %v1432_v3  ;;  %v1440_v11 = vld [vmem:[%s1841_s1 + $0xa8] sm:$0xff]   ;;  %v1441_v12 = vld [vmem:[%s1841_s1 + $0x60] sm:$0xff]   ;;  %v1445_v16 = vld [vmem:[%s1841_s1 + $0x58] sm:$0xff]   ;;  %s291_s13 = scalar_lea.vmem %s1847_s7, %s1194_s10 }
  0x20   : > { %1297 = vmatprep.subr.bf16.mxu1 %v1435_v6  ;;  %v1442_v13 = vld [vmem:[%s1841_s1 + $0x20] sm:$0xff]   ;;  %v1446_v17 = vld [vmem:[%s1841_s1 + $0x18] sm:$0xff]   ;;  %v1449_v20 = vld [vmem:[%s1841_s1 + $0x50] sm:$0xff]   ;;  %s1711_s9 = scalar_lea.vmem %s1840_s0, %s1405_s19 }
  0x21   : > { %1276 = vmatpush3.bf16.msra.mxu0 %v1434_v5  ;;  %v1443_v14 = vld [vmem:[%s1841_s1 + $0xe0] sm:$0xff]   ;;  %v1447_v18 = vld [vmem:[%s1841_s1 + $0xd8] sm:$0xff]   ;;  %v1450_v21 = vld [vmem:[%s1841_s1 + $0x10] sm:$0xff]  }
  0x22   : > { %1277 = vmatprep.subr.bf16.mxu0 %v1437_v8  ;;  %v1444_v15 = vld [vmem:[%s1841_s1 + $0xa0] sm:$0xff]   ;;  %v1448_v19 = vld [vmem:[%s1841_s1 + $0x98] sm:$0xff]   ;;  %v1451_v22 = vld [vmem:[%s1841_s1 + $0xd0] sm:$0xff]  }
  0x23   : > { %1298 = vmatpush3.bf16.msra.mxu1 %v1436_v7  ;;  %v1452_v23 = vld [vmem:[%s1841_s1 + $0x90] sm:$0xff]   ;;  %v1453_v24 = vld [vmem:[%s1841_s1 + $0x48] sm:$0xff]   ;;  %v1457_v28 = vld [vmem:[%s1841_s1 + $0x40] sm:$0xff]  }
  0x24   : > { %1299 = vmatprep.subr.bf16.mxu1 %v1439_v10  ;;  %v1454_v25 = vld [vmem:[%s1841_s1 + $0x8] sm:$0xff]   ;;  %v1458_v29 = vld [vmem:[%s1841_s1] sm:$0xff]   ;;  %v1464_v35 = vld [vmem:[%s1841_s1 + $0x178] sm:$0xff]  }
  0x25   : > { %1278 = vmatpush3.bf16.msra.mxu0 %v1438_v9  ;;  %v1455_v26 = vld [vmem:[%s1841_s1 + $0xc8] sm:$0xff]   ;;  %v1459_v30 = vld [vmem:[%s1841_s1 + $0xc0] sm:$0xff]   ;;  %v1467_v39 = vld [vmem:[%s1841_s1 + $0x138] sm:$0xff]  }
  0x26   : > { %1279 = vmatprep.subr.bf16.mxu0 %v1441_v12  ;;  %v1456_v27 = vld [vmem:[%s1841_s1 + $0x88] sm:$0xff]   ;;  %v293_v31 = vld [vmem:[%s1711_s9] sm:$0xff]  ;;  %v1468_v40 = vld [vmem:[%s1841_s1 + $0x170] sm:$0xff]  }
  0x27   : > { %1300 = vmatpush3.bf16.msra.mxu1 %v1440_v11  ;;  %v1196_v32 = vcombine.low %v293_v31, %v293_v31  ;;  %v1197_v33 = vcombine.high %v293_v31, %v293_v31  ;;  %v1463_v34 = vld [vmem:[%s1841_s1 + $0x80] sm:$0xff]   ;;  %v294_v36 = vld [vmem:[%s1711_s9 + $0x8] sm:$0xff]  ;;  %v1469_v42 = vld [vmem:[%s1841_s1 + $0x130] sm:$0xff]  }
  0x28   : > { %1301 = vmatprep.subr.bf16.mxu1 %v1443_v14  ;;  %v1198_v37 = vcombine.low %v294_v36, %v294_v36  ;;  %v1199_v38 = vcombine.high %v294_v36, %v294_v36  ;;  %v1470_v43 = vld [vmem:[%s1841_s1 + $0x168] sm:$0xff]   ;;  %v1472_v45 = vld [vmem:[%s1841_s1 + $0x160] sm:$0xff]   ;;  %v1474_v47 = vld [vmem:[%s1841_s1 + $0x158] sm:$0xff]  }
  0x29   : > { %1280 = vmatpush3.bf16.msra.mxu0 %v1442_v13  ;;  %756 = vmatprep.mubr.bf16.mxu0 %v1197_v33  ;;  %v1471_v44 = vld [vmem:[%s1841_s1 + $0x128] sm:$0xff]   ;;  %v1473_v46 = vld [vmem:[%s1841_s1 + $0x120] sm:$0xff]   ;;  %v1475_v48 = vld [vmem:[%s1841_s1 + $0x118] sm:$0xff]  }
  0x2a   : > { %1281 = vmatprep.subr.bf16.mxu0 %v1445_v16  ;;  %796 = vmatprep.mubr.bf16.mxu1 %v1199_v38  ;;  %v1462_v49 = vld [vmem:[%s1711_s9 + $0x18] ss:$0 sps:$4 sm:$0xff]   ;;  %v1476_v50 = vld [vmem:[%s1841_s1 + $0x150] sm:$0xff]   ;;  %v1482_v51 = vld [vmem:[%s1841_s1 + $0x180] sm:$0xff]  }
  0x2b   : > { %1302 = vmatpush3.bf16.msra.mxu1 %v1444_v15  ;;  %v295_v52 = vld [vmem:[%s1711_s9 + $0x10] sm:$0xff]  ;;  %v1478_v55 = vld [vmem:[%s1841_s1 + $0x148] sm:$0xff]   ;;  %v1480_v57 = vld [vmem:[%s1841_s1 + $0x140] sm:$0xff]  }
  0x2c   : > { %1303 = vmatprep.subr.bf16.mxu1 %v1447_v18  ;;  %v1477_v53 = vld [vmem:[%s1841_s1 + $0x110] sm:$0xff]   ;;  %v1201_v54 = vcombine.high %v295_v52, %v295_v52  ;;  %v1479_v56 = vld [vmem:[%s1841_s1 + $0x108] sm:$0xff]   ;;  %v1481_v58 = vld [vmem:[%s1841_s1 + $0x100] sm:$0xff]   ;;  %v1200_v59 = vcombine.low %v295_v52, %v295_v52 }
  0x2d   : > { %1282 = vmatpush3.bf16.msra.mxu0 %v1446_v17  ;;  %v1485_v60 = vld [vmem:[%s1843_s3 + $0x38] sm:$0xff]   ;;  %v1486_v61 = vld [vmem:[%s1843_s3 + $0x30] sm:$0xff]   ;;  %v1487_v62 = vld [vmem:[%s1843_s3 + $0x28] sm:$0xff]  }
  0x2e   : > { %1283 = vmatprep.subr.bf16.mxu0 %v1449_v20  ;;  %v1488_v63 = vld [vmem:[%s1843_s3 + $0x20] sm:$0xff]   ;;  %v1489_v0 = vld [vmem:[%s1843_s3 + $0x18] sm:$0xff]   ;;  %v1490_v1 = vld [vmem:[%s1843_s3 + $0x10] sm:$0xff]  }
  0x2f   : > { %1304 = vmatpush3.bf16.msra.mxu1 %v1448_v19  ;;  %v1491_v2 = vld [vmem:[%s1843_s3 + $0x8] sm:$0xff]   ;;  %v1492_v3 = vld [vmem:[%s1843_s3] sm:$0xff]   ;;  %v1493_v4 = vld [vmem:[#allocation2 + $0x38] sm:$0xff]  }
  0x30   : > { %1305 = vmatprep.subr.bf16.mxu1 %v1451_v22  ;;  %v1494_v5 = vld [vmem:[#allocation2 + $0x30] sm:$0xff]   ;;  %v1495_v6 = vld [vmem:[#allocation2 + $0x28] sm:$0xff]   ;;  %v1496_v7 = vld [vmem:[#allocation2 + $0x20] sm:$0xff]  }
  0x31   : > { %1284 = vmatpush3.bf16.msra.mxu0 %v1450_v21  ;;  %v1497_v8 = vld [vmem:[#allocation2 + $0x18] sm:$0xff]   ;;  %v1498_v9 = vld [vmem:[#allocation2 + $0x10] sm:$0xff]   ;;  %v1499_v36 = vld [vmem:[#allocation2 + $0x8] sm:$0xff]  }
  0x32   : > { %1285 = vmatprep.subr.bf16.mxu0 %v1453_v24  ;;  %v1253_v38 = vld [vmem:[%s1844_s4] ss:$0 sm:$0xff] }
  0x33   : > { %1306 = vmatpush3.bf16.msra.mxu1 %v1452_v23  ;;  %v1195_v23 = vld [vmem:[%s1842_s2] ss:$0 sm:$0xff] }
  0x34   : > { %1307 = vmatprep.subr.bf16.mxu1 %v1455_v26 }
  0x35   : > { %1286 = vmatpush3.bf16.msra.mxu0 %v1454_v25 }
  0x36   : > { %1287 = vmatprep.subr.bf16.mxu0 %v1457_v28 }
  0x37   : > { %1308 = vmatpush3.bf16.msra.mxu1 %v1456_v27 }
  0x38   : > { %1309 = vmatprep.subr.bf16.mxu1 %v1459_v30 }
  0x39   : > { %1288 = vmatpush3.bf16.msra.mxu0 %v1458_v29 }
  0x3a   : > { %1317 = vmatprep.subr.bf16.mxu0 %v1464_v35 }
  0x3b   : > { %1310 = vmatpush3.bf16.msra.mxu1 %v1463_v34 }
  0x3c   : > { %757 = vmatmul.mubr.bf16.vlgmr.msra.gmra.mxu0 %v1196_v32  ;;  %1359 = vmatprep.subr.bf16.mxu1 %v1546_v41 }
  0x3d   : > { %1318 = vmatpush3.bf16.msra.mxu0 %v1467_v39  ;;  %836 = vmatprep.mubr.bf16.mxu0 %v1201_v54 }
  0x3e   : > { %797 = vmatmul.mubr.bf16.vlgmr.msra.gmra.mxu1 %v1198_v37  ;;  %1319 = vmatprep.subr.bf16.mxu0 %v1468_v40  ;;  %v1500_v37 = vld [vmem:[#allocation2] sm:$0xff]  }
  0x3f   : > { %1361 = vmatprep.mubr.msk.bf16.mxu1 %vm1547_vm0, %v1546_v41  ;;  %1360 = vmatpush3.bf16.msra.mxu1 %v1482_v51 }
  0x40   : > { %1365 = vmatprep.subr.bf16.mxu1 %v1546_v41 }
  0x41   : > { %1320 = vmatpush3.bf16.msra.mxu0 %v1469_v42 }
  0x42   : > { %1321 = vmatprep.subr.bf16.mxu0 %v1470_v43 }
  0x45   : > { %1322 = vmatpush3.bf16.msra.mxu0 %v1471_v44 }
  0x46   : > { %1323 = vmatprep.subr.bf16.mxu0 %v1472_v45  ;;  %1362 = vmatmul.mubr.msk.bf16.vlgmr.msra.gmra.mxu1 %vm720_vm1, %v1462_v49 }
  0x47   : > { %1381 = vmatprep.mubr.msk.bf16.mxu1 %vm1547_vm0, %v1546_v41  ;;  %1366 = vmatpush3.bf16.msra.mxu1 %v1485_v60 }
  0x48   : > { %1367 = vmatprep.subr.bf16.mxu1 %v1546_v41 }
  0x49   : > { %1324 = vmatpush3.bf16.msra.mxu0 %v1473_v46 }
  0x4a   : > { %1325 = vmatprep.subr.bf16.mxu0 %v1474_v47  ;;  %v1262_v47 = vld [vmem:[%s1846_s6] ss:$0 sm:$0xff] }
  0x4b   : > { %1368 = vmatpush3.bf16.msra.mxu1 %v1486_v61 }
  0x4c   : > { %1369 = vmatprep.subr.bf16.mxu1 %v1546_v41 }
  0x4d   : > { %1326 = vmatpush3.bf16.msra.mxu0 %v1475_v48 }
  0x4e   : > { %1327 = vmatprep.subr.bf16.mxu0 %v1476_v50 }
  0x4f   : > { %1370 = vmatpush3.bf16.msra.mxu1 %v1487_v62 }
  0x50   : > { %1371 = vmatprep.subr.bf16.mxu1 %v1546_v41 }
  0x51   : > { %1328 = vmatpush3.bf16.msra.mxu0 %v1477_v53 }
  0x52   : > { %1329 = vmatprep.subr.bf16.mxu0 %v1478_v55 }
  0x53   : > { %1372 = vmatpush3.bf16.msra.mxu1 %v1488_v63 }
  0x54   : > { %1373 = vmatprep.subr.bf16.mxu1 %v1546_v41 }
  0x55   : > { %1330 = vmatpush3.bf16.msra.mxu0 %v1479_v56 }
  0x56   : > { %1331 = vmatprep.subr.bf16.mxu0 %v1480_v57 }
  0x57   : > { %1374 = vmatpush3.bf16.msra.mxu1 %v1489_v0 }
  0x58   : > { %1375 = vmatprep.subr.bf16.mxu1 %v1546_v41 }
  0x59   : > { %1332 = vmatpush3.bf16.msra.mxu0 %v1481_v58 }
  0x5a   : > { %1385 = vmatprep.subr.bf16.mxu0 %v1546_v41 }
  0x5b   : > { %1376 = vmatpush3.bf16.msra.mxu1 %v1490_v1 }
  0x5c   : > { %837 = vmatmul.mubr.bf16.vlgmr.msra.gmra.mxu0 %v1200_v59  ;;  %1377 = vmatprep.subr.bf16.mxu1 %v1546_v41 }
  0x5d   : > { %1401 = vmatprep.mubr.msk.bf16.mxu0 %vm1547_vm0, %v1546_v41  ;;  %1386 = vmatpush3.bf16.msra.mxu0 %v1493_v4 }
  0x5e   : > { %1387 = vmatprep.subr.bf16.mxu0 %v1546_v41 }
  0x5f   : > { %1378 = vmatpush3.bf16.msra.mxu1 %v1491_v2 }
  0x60   : > { %1379 = vmatprep.subr.bf16.mxu1 %v1546_v41 }
  0x61   : > { %1388 = vmatpush3.bf16.msra.mxu0 %v1494_v5 }
  0x62   : > { %1389 = vmatprep.subr.bf16.mxu0 %v1546_v41 }
  0x63   : > { %1380 = vmatpush3.bf16.msra.mxu1 %v1492_v3 }
  0x65   : > { %1390 = vmatpush3.bf16.msra.mxu0 %v1495_v6 }
  0x66   : > { %1391 = vmatprep.subr.bf16.mxu0 %v1546_v41 }
  0x69   : > { %1392 = vmatpush3.bf16.msra.mxu0 %v1496_v7 }
  0x6a   : > { %1393 = vmatprep.subr.bf16.mxu0 %v1546_v41 }
  0x6d   : > { %1394 = vmatpush3.bf16.msra.mxu0 %v1497_v8 }
  0x6e   : > { %1395 = vmatprep.subr.bf16.mxu0 %v1546_v41 }
  0x71   : > { %1396 = vmatpush3.bf16.msra.mxu0 %v1498_v9 }
  0x72   : > { %1397 = vmatprep.subr.bf16.mxu0 %v1546_v41 }
  0x75   : > { %1398 = vmatpush3.bf16.msra.mxu0 %v1499_v36 }
  0x76   : > { %1399 = vmatprep.subr.bf16.mxu0 %v1546_v41 }
  0x79   : > { %1400 = vmatpush3.bf16.msra.mxu0 %v1500_v37 }
  0xfc   : > { %v1289_v10 = vpop.f32.mrf.mxu0 }
  0xfe   : > { %v1290_v11 = vpop.f32.mrf.mxu0  ;;  %v1311_v12 = vpop.f32.mrf.mxu1 }
  0xff   : > { %v1291_v22 = vadd.f32 %v1290_v11, %v1289_v10 }
 0x100   : > { %v1292_v13 = vpop.f32.mrf.mxu0  ;;  %v1312_v14 = vpop.f32.mrf.mxu1 }
 0x101   : > { %v759_v24 = vadd.f32 %v1291_v22, %v1195_v23  ;;  %v1313_v25 = vadd.f32 %v1312_v14, %v1311_v12 }
 0x102   : > { %v1293_v15 = vpop.f32.mrf.mxu0  ;;  %v1314_v16 = vpop.f32.mrf.mxu1 }
 0x103   : > { %v799_v28 = vadd.f32 %v1313_v25, %v759_v24 }
 0x104   : > { %v1315_v17 = vpop.f32.mrf.mxu1 }
 0x106   : > { %v878_v18 = vpop.f32.mrf.mxu1 }
 0x108   : > { %v1363_v19 = vpop.f32.mrf.mxu1 }
 0x10a   : > { %v881_v20 = vpop.f32.mrf.mxu1 }
 0x10c   : > { %v1364_v21 = vpop.f32.mrf.mxu1 }
 0x11c   : > { %v1333_v26 = vpop.f32.mrf.mxu0 }
 0x11e   : > { %v1334_v27 = vpop.f32.mrf.mxu0 }
 0x11f   : > { %v1335_v29 = vadd.f32 %v1334_v27, %v1333_v26 }
 0x120   : > { %v1336_v30 = vpop.f32.mrf.mxu0 }
 0x121   : > { %v839_v31 = vadd.f32 %v1335_v29, %v799_v28 }
 0x122   : > { %v1337_v32 = vpop.f32.mrf.mxu0 }
 0x123   : > { %v879_v33 = vadd.f32 %v878_v18, %v839_v31 }
 0x125   : > { %v884_v34 = vmax.f32 %v879_v33, 0.0 }
 0x127   : > { %v885_v35 = vpack.c.bf16 %v884_v34, %v884_v34 }
 0x129   : > { %1382 = vmatmul.mubr.bf16.vlgmr.msra.gmra.mxu1 %v885_v35 }
 0x1e9   : > { %v991_v39 = vpop.f32.mrf.mxu1 }
 0x1ea   : > { %v992_v40 = vadd.f32 %v1253_v38, %v991_v39 }
 0x1eb   : > { %v1383_v42 = vpop.f32.mrf.mxu1 }
 0x1ec   : > { %v997_v43 = vmax.f32 %v992_v40, 0.0 }
 0x1ed   : > { %v994_v44 = vpop.f32.mrf.mxu1 }
 0x1ee   : > { %v998_v45 = vpack.c.bf16 %v997_v43, %v997_v43 }
 0x1ef   : > { %v1384_v46 = vpop.f32.mrf.mxu1 }
 0x1f0   : > { %1402 = vmatmul.mubr.bf16.vlgmr.msra.gmra.mxu0 %v998_v45 }
 0x2b0   : > { %v1104_v41 = vpop.f32.mrf.mxu0 }
 0x2b1   : > { %v1105_v48 = vadd.f32 %v1262_v47, %v1104_v41 }
 0x2b2   : > { %v1403_v49 = vpop.f32.mrf.mxu0 }
 0x2b3   : > { %1110 = vmax.xlane.f32.xlu0 %v1105_v48 }
 0x2b4   : > { %v1107_v50 = vpop.f32.mrf.mxu0 }
 0x2b6   : > { %v1404_v51 = vpop.f32.mrf.mxu0 }
 0x33c   : > { %v1111_v52 = vpop.xlane.xlu0 %1110 }
 0x33d   : > { %v1112_v53 = vsub.f32 %v1105_v48, %v1111_v52 }
 0x33f   : > { %v1113_v54 = vmul.f32 1.442695, %v1112_v53 }
 0x341   : > { %1501 = vpow2.f32 %v1113_v54 }
 0x34e   : > { %v1502_v55 = vpop.eup %1501 }
 0x34f   : > { %1115 = vadd.xlane.f32.xlu0 %v1502_v55 }
 0x3d8   : > { %v1116_v56 = vpop.xlane.xlu0 %1115 }
 0x3d9   : > { %1503 = vlog2.f32 %v1116_v56 }
 0x3e6   : > { %v1504_v57 = vpop.eup %1503 }
 0x3e7   : > { %v1118_v58 = vmul.f32 0.6931472, %v1504_v57 }
 0x3e9   : > { %v1119_v59 = vsub.f32 %v1112_v53, %v1118_v58 }
 0x3eb   : > { %1120 = vst [vmem:[%s291_s13] sm:$0xff] %v1119_v59 }
 0x3ec PF: > { %s18_s24 = sadd.s32 1, %s1541_s24  }
 0x3ed   : > { %p15_p1 = scmp.ge.s32.totalorder %s18_s24, 4  }
 0x3ef   :  { %17 = sbr.rel (!%p15_p1) target bundleno = 1 (0x1), region = 83 }
 0x3f4   :  { %1140 = vsyncpa [#allocation3], 1 }
 0x3f5   :  { %1142 = vsyncpa [#allocation3 + $0x1], 1 }

</bundles_post_ra>
